<compile_context>
chip_gen: v6e
topology: v6e:2x2x1
jax: 0.10.0
libtpu: 0.0.40
codegen_flags: <defaults>
</compile_context>

<pallas_src>
import math
import functools

import numpy as np
import jax
import jax.numpy as jnp
from jax.experimental import pallas as pl
from jax.experimental.pallas import tpu as pltpu


# ----------------------------------------------------------------------------
# e3nn math reproduced in numpy (setup-time only)
# ----------------------------------------------------------------------------
def _su2_cg(j1, m1, j2, m2, j3, m3):
    """Clebsch-Gordan coefficient <j1 m1 j2 m2 | j3 m3> (Condon-Shortley)."""
    f = math.factorial
    if m1 + m2 != m3:
        return 0.0
    if not (abs(j1 - j2) <= j3 <= j1 + j2):
        return 0.0
    if abs(m1) > j1 or abs(m2) > j2 or abs(m3) > j3:
        return 0.0
    pref = (2 * j3 + 1) * f(j3 + j1 - j2) * f(j3 - j1 + j2) * f(j1 + j2 - j3) / f(j1 + j2 + j3 + 1)
    pref = math.sqrt(pref * f(j3 + m3) * f(j3 - m3) * f(j1 - m1) * f(j1 + m1) * f(j2 - m2) * f(j2 + m2))
    kmin = max(0, j2 - j3 - m1, j1 - j3 + m2)
    kmax = min(j1 + j2 - j3, j1 - m1, j2 + m2)
    s = 0.0
    for k in range(kmin, kmax + 1):
        s += (-1.0) ** k / (f(k) * f(j1 + j2 - j3 - k) * f(j1 - m1 - k)
                            * f(j2 + m2 - k) * f(j3 - j2 + m1 + k) * f(j3 - j1 - m2 + k))
    return pref * s


def _change_basis_real_to_complex(l):
    q = np.zeros((2 * l + 1, 2 * l + 1), dtype=np.complex128)
    for m in range(-l, 0):
        q[l + m, l + abs(m)] = 1.0 / math.sqrt(2)
        q[l + m, l - abs(m)] = -1j / math.sqrt(2)
    q[l, l] = 1.0
    for m in range(1, l + 1):
        q[l + m, l + abs(m)] = (-1) ** m / math.sqrt(2)
        q[l + m, l - abs(m)] = 1j * (-1) ** m / math.sqrt(2)
    return (-1j) ** l * q


def _wigner_3j(l1, l2, l3):
    """Real-basis Wigner-3j tensor, unit Frobenius norm (e3nn convention)."""
    C = np.zeros((2 * l1 + 1, 2 * l2 + 1, 2 * l3 + 1), dtype=np.complex128)
    for m1 in range(-l1, l1 + 1):
        for m2 in range(-l2, l2 + 1):
            m3 = m1 + m2
            if abs(m3) <= l3:
                C[l1 + m1, l2 + m2, l3 + m3] = _su2_cg(l1, m1, l2, m2, l3, m3)
    Q1 = _change_basis_real_to_complex(l1)
    Q2 = _change_basis_real_to_complex(l2)
    Q3 = _change_basis_real_to_complex(l3)
    C = np.einsum("ij,kl,mn,ikn->jlm", Q1, Q2, np.conj(Q3.T), C)
    C = np.real(C)
    n = np.linalg.norm(C)
    return C / max(n, 1e-12)


def _parse_irreps(s):
    irreps = []
    for tok in s.split("+"):
        tok = tok.strip()
        mul, ir = tok.split("x")
        l = int(ir[:-1])
        p = 1 if ir[-1] == "e" else -1
        irreps.append((int(mul), l, p))
    return irreps


def _irreps_dim(irreps):
    return sum(mul * (2 * l + 1) for mul, l, _ in irreps)


def _build_fc_tensor_product(ir_in1, ir_in2, ir_out):
    """Dense path tensor T[p, i, j, k] for e3nn FullyConnectedTensorProduct
    (shared_weights=False, 'uvw' paths, component/element normalization)."""
    d1, d2, do = _irreps_dim(ir_in1), _irreps_dim(ir_in2), _irreps_dim(ir_out)

    def offsets(irreps):
        offs, o = [], 0
        for mul, l, _ in irreps:
            offs.append(o)
            o += mul * (2 * l + 1)
        return offs

    off1, off2, offo = offsets(ir_in1), offsets(ir_in2), offsets(ir_out)

    instructions = []
    for i1, (m1, l1, p1) in enumerate(ir_in1):
        for i2, (m2, l2, p2) in enumerate(ir_in2):
            for io, (mo, lo, po) in enumerate(ir_out):
                if po == p1 * p2 and abs(l1 - l2) <= lo <= l1 + l2:
                    instructions.append((i1, i2, io))

    fan = {}
    for i1, i2, io in instructions:
        fan[io] = fan.get(io, 0.0) + ir_in1[i1][0] * ir_in2[i2][0]

    weight_numel = sum(ir_in1[i1][0] * ir_in2[i2][0] * ir_out[io][0]
                       for i1, i2, io in instructions)

    T = np.zeros((weight_numel, d1, d2, do), dtype=np.float64)
    p_off = 0
    for i1, i2, io in instructions:
        mul1, l1, _ = ir_in1[i1]
        mul2, l2, _ = ir_in2[i2]
        mulo, lo, _ = ir_out[io]
        dd1, dd2, ddo = 2 * l1 + 1, 2 * l2 + 1, 2 * lo + 1
        path_w = math.sqrt(ddo / fan[io])           # component / element norm
        C = path_w * _wigner_3j(l1, l2, lo)
        for u in range(mul1):
            for v in range(mul2):
                for w in range(mulo):
                    p = p_off + (u * mul2 + v) * mulo + w
                    T[p,
                      off1[i1] + u * dd1: off1[i1] + (u + 1) * dd1,
                      off2[i2] + v * dd2: off2[i2] + (v + 1) * dd2,
                      offo[io] + w * ddo: offo[io] + (w + 1) * ddo] = C
        p_off += mul1 * mul2 * mulo
    return T, weight_numel


# ----------------------------------------------------------------------------
# spherical harmonics '1x0e + 1x1o + 1x2e', normalize=True, 'component'
# (cheap elementwise glue; done in plain JAX)
# ----------------------------------------------------------------------------
def spherical_harmonics_0e_1o_2e(vec):
    r = jnp.linalg.norm(vec, axis=-1, keepdims=True)
    v = vec / jnp.maximum(r, 1e-12)
    x, y, z = v[..., 0], v[..., 1], v[..., 2]
    s3 = math.sqrt(3.0)
    sh0 = jnp.ones_like(x)[..., None]
    sh1 = s3 * jnp.stack([x, y, z], axis=-1)
    sh2 = math.sqrt(5.0) * jnp.stack(
        [s3 * x * z,
         s3 * x * y,
         y * y - 0.5 * (x * x + z * z),
         s3 * y * z,
         0.5 * s3 * (z * z - x * x)], axis=-1)
    return jnp.concatenate([sh0, sh1, sh2], axis=-1).astype(jnp.float32)


# ----------------------------------------------------------------------------
# Pallas kernels
# ----------------------------------------------------------------------------
def _linear_kernel(x_ref, w_ref, b_ref, o_ref):
    o_ref[...] = (jnp.dot(x_ref[...], w_ref[...],
                          preferred_element_type=jnp.float32) + b_ref[...])


def _pallas_linear(x, w, b):
    n, din = x.shape
    dout = w.shape[1]
    return pl.pallas_call(
        _linear_kernel,
        out_shape=jax.ShapeDtypeStruct((n, dout), jnp.float32),
        grid=(1,),
        in_specs=[pl.BlockSpec((n, din), lambda i: (0, 0)),
                  pl.BlockSpec((din, dout), lambda i: (0, 0)),
                  pl.BlockSpec((1, dout), lambda i: (0, 0))],
        out_specs=pl.BlockSpec((n, dout), lambda i: (0, 0)),
    )(x, w, b)


def _tp_edge_kernel(x1_ref, sh_ref, ea_ref,
                    w1_ref, b1_ref, w2_ref, b2_ref,
                    e1_ref, e2_ref, tb_ref, e4_ref,
                    out_ref):
    f32 = jnp.float32
    # fc MLP: edge-dependent tensor-product weights (Linear -> Softplus -> Linear)
    h = jnp.dot(ea_ref[...], w1_ref[...], preferred_element_type=f32) + b1_ref[...]
    h = jnp.where(h > 20.0, h, jnp.log1p(jnp.exp(jnp.minimum(h, 20.0))))
    w = jnp.dot(h, w2_ref[...], preferred_element_type=f32) + b2_ref[...]        # (TE, Ppad)

    # z[e, i*d2+j] = x1[e,i] * sh[e,j]  (tiny 0/1 Kronecker expansion matmuls)
    x1e = jnp.dot(x1_ref[...], e1_ref[...], preferred_element_type=f32)          # (TE, d1*d2)
    she = jnp.dot(sh_ref[...], e2_ref[...], preferred_element_type=f32)          # (TE, d1*d2)
    z = x1e * she

    # y[e, k*Ppad+p] = sum_ij z[e,ij] * T[p,i,j,k]     -- the dominant MXU matmul
    y = jnp.dot(z, tb_ref[...], preferred_element_type=f32)                      # (TE, do*Ppad)

    # we[e, k*Ppad+p] = w[e,p]: lane-tile of w by concat-doubling.  Ppad is a
    # multiple of 128, so every concat operand / slice bound is lane-aligned —
    # pure vreg copies on the VPU load/store slots, no MXU, no masked shifts.
    # (This replaces the old E3 expansion matmul, which cost more FLOPs than y
    #  itself and was the largest VMEM constant.)
    we = w
    while we.shape[1] < y.shape[1]:
        we = jnp.concatenate([we, we], axis=1)
    we = we[:, :y.shape[1]]

    # out[e,k] = sum_p w[e,p] * y[e, k*Ppad+p]   via E4 = kron(eye(do), ones(Ppad,1))
    out_ref[...] = jnp.dot(we * y, e4_ref[...], preferred_element_type=f32)      # (TE, do)


def _pallas_tp_layer(x1, sh, ea, layer, tile_e=128):
    """x1/sh/ea are already padded so their row count is a multiple of tile_e."""
    e_pad, d1 = x1.shape
    d2 = sh.shape[1]
    ed = ea.shape[1]
    dout = layer["dout"]
    assert e_pad % tile_e == 0

    def edge_map(e):
        return (e, 0)

    def const_map(e):
        return (0, 0)

    in_specs = [
        pl.BlockSpec((tile_e, d1), edge_map),
        pl.BlockSpec((tile_e, d2), edge_map),
        pl.BlockSpec((tile_e, ed), edge_map),
        pl.BlockSpec(layer["w1"].shape, const_map),
        pl.BlockSpec(layer["b1"].shape, const_map),
        pl.BlockSpec(layer["w2"].shape, const_map),
        pl.BlockSpec(layer["b2"].shape, const_map),
        pl.BlockSpec(layer["E1"].shape, const_map),
        pl.BlockSpec(layer["E2"].shape, const_map),
        pl.BlockSpec(layer["TB"].shape, const_map),
        pl.BlockSpec(layer["E4"].shape, const_map),
    ]
    return pl.pallas_call(
        _tp_edge_kernel,
        out_shape=jax.ShapeDtypeStruct((e_pad, dout), jnp.float32),
        grid=(e_pad // tile_e,),
        in_specs=in_specs,
        out_specs=pl.BlockSpec((tile_e, dout), edge_map),
        compiler_params=pltpu.CompilerParams(
            dimension_semantics=("parallel",),          # megacore sharding on v7x
            vmem_limit_bytes=64 * 1024 * 1024),         # constants > 16 MiB v5e default
    )(x1, sh, ea,
      layer["w1"], layer["b1"], layer["w2"], layer["b2"],
      layer["E1"], layer["E2"], layer["TB"], layer["E4"])


# ----------------------------------------------------------------------------
# Model setup / forward
# ----------------------------------------------------------------------------
def _build_tp_layer(key, in_irreps_s, sh_irreps_s, out_irreps_s, edge_dim, residual):
    ir1 = _parse_irreps(in_irreps_s)
    ir2 = _parse_irreps(sh_irreps_s)
    iro = _parse_irreps(out_irreps_s)
    T, P = _build_fc_tensor_product(ir1, ir2, iro)
    d1, d2, do = _irreps_dim(ir1), _irreps_dim(ir2), _irreps_dim(iro)

    # Pad path count to a lane multiple so the in-kernel weight tile is aligned.
    p_pad = ((P + 127) // 128) * 128
    Tp = np.zeros((p_pad, d1, d2, do), dtype=np.float64)
    Tp[:P] = T
    # k-major output columns: TB[i*d2+j, k*Ppad+p] = T[p,i,j,k]
    TB = np.transpose(Tp, (1, 2, 3, 0)).reshape(d1 * d2, do * p_pad)
    E1 = np.kron(np.eye(d1), np.ones((1, d2)))          # (d1, d1*d2)
    E2 = np.kron(np.ones((1, d1)), np.eye(d2))          # (d2, d1*d2)
    E4 = np.kron(np.eye(do), np.ones((p_pad, 1)))       # (do*Ppad, do)

    k1, k2 = jax.random.split(key)
    w1 = jax.random.normal(k1, (edge_dim, edge_dim), jnp.float32) / math.sqrt(edge_dim)
    b1 = jnp.zeros((1, edge_dim), jnp.float32)
    w2 = jax.random.normal(k2, (edge_dim, P), jnp.float32) / math.sqrt(edge_dim)
    w2 = jnp.pad(w2, ((0, 0), (0, p_pad - P)))          # padded paths get zero weight
    b2 = jnp.zeros((1, p_pad), jnp.float32)
    return dict(
        w1=w1, b1=b1, w2=w2, b2=b2,
        E1=jnp.asarray(E1, jnp.float32), E2=jnp.asarray(E2, jnp.float32),
        TB=jnp.asarray(TB, jnp.float32), E4=jnp.asarray(E4, jnp.float32),
        T_ref=np.asarray(T, np.float32),                 # for the pure-JAX check
        P=P, Ppad=p_pad, d1=d1, dout=do, residual=residual,
    )


def init_comformer_conv_equi(key, in_channels, edge_dim, ns=16, nv=2, residual=True):
    irrep_seq = [
        f"{ns}x0e",
        f"{ns}x0e + {nv}x1o + {nv}x2e",
        f"{ns}x0e + {nv}x1o + {nv}x1e + {nv}x2e + {nv}x2o",
        "1x0e + 1x0o + 1x1e + 1x1o + 1x2e + 1x2o + 1x3e + 1x3o",
    ]
    sh = "1x0e + 1x1o + 1x2e"
    k0, k1, k2, k3 = jax.random.split(key, 4)
    node_w = jax.random.normal(k0, (in_channels, ns), jnp.float32) / math.sqrt(in_channels)
    node_b = jnp.zeros((1, ns), jnp.float32)
    layers = [
        _build_tp_layer(k1, irrep_seq[0], sh, irrep_seq[1], edge_dim, residual),
        _build_tp_layer(k2, irrep_seq[1], sh, irrep_seq[2], edge_dim, False),
        _build_tp_layer(k3, irrep_seq[2], sh, irrep_seq[3], edge_dim, False),
    ]
    return dict(node_w=node_w, node_b=node_b, layers=layers)


def comformer_conv_equi_forward(model, node_feature, edge_index, edge_vec, edge_feature,
                                tile_e=128):
    # PyTorch reference: gather from edge_dst (=edge_index[1]), scatter onto edge_src.
    edge_src, edge_dst = edge_index[0], edge_index[1]
    n_nodes = node_feature.shape[0]
    n_edges = edge_vec.shape[0]

    # Pad edges up to a multiple of tile_e; padded rows produce zeros and are
    # sliced off before the scatter-mean so node counts stay correct.
    e_pad = ((n_edges + tile_e - 1) // tile_e) * tile_e
    pad = e_pad - n_edges

    edge_sh = spherical_harmonics_0e_1o_2e(edge_vec)                 # (E, 9)
    edge_sh_p = jnp.pad(edge_sh, ((0, pad), (0, 0))) if pad else edge_sh
    edge_feat_p = jnp.pad(edge_feature, ((0, pad), (0, 0))) if pad else edge_feature
    edge_dst_p = jnp.pad(edge_dst, (0, pad)) if pad else edge_dst

    nf = _pallas_linear(node_feature, model["node_w"], model["node_b"])  # node_linear

    for layer in model["layers"]:
        # TODO(synk): gather/scatter-mean have data-dependent indices; they stay in
        # XLA (jnp.take / .at[].add) — an in-kernel version would need per-edge
        # manual DMA beyond what BlockSpec index_maps can express.
        x1 = jnp.take(nf, edge_dst_p, axis=0)                        # (E_pad, d1)
        tp = _pallas_tp_layer(x1, edge_sh_p, edge_feat_p, layer,
                              tile_e=tile_e)[:n_edges]               # drop padded edges
        summed = jnp.zeros((n_nodes, layer["dout"]), jnp.float32).at[edge_src].add(tp)
        cnt = jnp.zeros((n_nodes,), jnp.float32).at[edge_src].add(1.0)
        out = summed / jnp.maximum(cnt, 1.0)[:, None]
        if layer["residual"]:
            out = out + jnp.pad(nf, ((0, 0), (0, layer["dout"] - nf.shape[1])))
        nf = out
    return nf


# ----------------------------------------------------------------------------
# pure-JAX reference (independent of the TB/E4 factorization) for validation
# ----------------------------------------------------------------------------
def _reference_forward(model, node_feature, edge_index, edge_vec, edge_feature):
    hp = jax.lax.Precision.HIGHEST
    edge_src, edge_dst = edge_index[0], edge_index[1]
    n_nodes = node_feature.shape[0]
    edge_sh = spherical_harmonics_0e_1o_2e(edge_vec)
    nf = jnp.dot(node_feature, model["node_w"], precision=hp) + model["node_b"]
    for layer in model["layers"]:
        P = layer["P"]
        x1 = jnp.take(nf, edge_dst, axis=0)
        h = jnp.dot(edge_feature, layer["w1"], precision=hp) + layer["b1"]
        h = jax.nn.softplus(h)
        w = jnp.dot(h, layer["w2"][:, :P], precision=hp) + layer["b2"][:, :P]
        T = jnp.asarray(layer["T_ref"], jnp.float32)
        tp = jnp.einsum("pijk,ep,ei,ej->ek", T, w, x1, edge_sh, precision=hp)
        summed = jnp.zeros((n_nodes, layer["dout"]), jnp.float32).at[edge_src].add(tp)
        cnt = jnp.zeros((n_nodes,), jnp.float32).at[edge_src].add(1.0)
        out = summed / jnp.maximum(cnt, 1.0)[:, None]
        if layer["residual"]:
            out = out + jnp.pad(nf, ((0, 0), (0, layer["dout"] - nf.shape[1])))
        nf = out
    return nf


# ----------------------------------------------------------------------------
if __name__ == "__main__":
    key = jax.random.PRNGKey(0)
    N, E = 8, 32
    in_channels, edge_dim, ns, nv = 16, 16, 4, 2

    k = jax.random.split(key, 6)
    node_feature = jax.random.normal(k[0], (N, in_channels), jnp.float32)
    edge_vec = jax.random.normal(k[1], (E, 3), jnp.float32)          # data.edge_attr
    edge_feature = jax.random.normal(k[2], (E, edge_dim), jnp.float32)
    edge_src = jax.random.randint(k[3], (E,), 0, N)
    edge_dst = jax.random.randint(k[4], (E,), 0, N)
    edge_index = jnp.stack([edge_src, edge_dst]).astype(jnp.int32)

    model = init_comformer_conv_equi(k[5], in_channels, edge_dim, ns=ns, nv=nv, residual=True)

    out = comformer_conv_equi_forward(model, node_feature, edge_index, edge_vec, edge_feature)
    out = jax.block_until_ready(out)
    assert out.shape == (N, 32), out.shape   # 1x0e+1x0o+1x1e+1x1o+1x2e+1x2o+1x3e+1x3o

    ref = jax.block_until_ready(
        _reference_forward(model, node_feature, edge_index, edge_vec, edge_feature))
    np.testing.assert_allclose(np.asarray(out), np.asarray(ref), rtol=2e-2, atol=2e-2)

    print("KERNEL_OK")
</pallas_src>

<mosaic_0001>
module attributes {stable_mosaic.version = 11 : i64} {
  func.func @_linear_kernel(%arg0: i32, %arg1: memref<8x16xf32, #tpu.memory_space<vmem>>, %arg2: memref<16x4xf32, #tpu.memory_space<vmem>>, %arg3: memref<1x4xf32, #tpu.memory_space<vmem>>, %arg4: memref<8x4xf32, #tpu.memory_space<vmem>>) attributes {dimension_semantics = [#tpu.dimension_semantics<arbitrary>], iteration_bounds = array<i64: 1>, scalar_prefetch = 0 : i64, scratch_operands = 0 : i64, tpu.core_type = #tpu.core_type<tc>, window_params = [{pipeline_mode = #tpu.pipeline_mode<synchronous>, transform_indices = @transform_0, window_bounds = array<i64: 8, 16>}, {pipeline_mode = #tpu.pipeline_mode<synchronous>, transform_indices = @transform_1, window_bounds = array<i64: 16, 4>}, {pipeline_mode = #tpu.pipeline_mode<synchronous>, transform_indices = @transform_2, window_bounds = array<i64: 1, 4>}, {pipeline_mode = #tpu.pipeline_mode<synchronous>, transform_indices = @transform_3, window_bounds = array<i64: 8, 4>}]} {
    %c0 = arith.constant 0 : index
    %c0_0 = arith.constant 0 : index
    %0 = vector.load %arg1[%c0, %c0_0] : memref<8x16xf32, #tpu.memory_space<vmem>>, vector<8x16xf32>
    %c0_1 = arith.constant 0 : index
    %c0_2 = arith.constant 0 : index
    %1 = vector.load %arg2[%c0_1, %c0_2] : memref<16x4xf32, #tpu.memory_space<vmem>>, vector<16x4xf32>
    %cst = arith.constant dense<0.000000e+00> : vector<8x4xf32>
    %2 = tpu.matmul %0, %1, %cst {dimension_numbers = #tpu.dot_dimension_numbers<[1], [0], [0], [1], [0, 0, 1, 1], [], []>} : vector<8x16xf32>, vector<16x4xf32>, vector<8x4xf32> -> vector<8x4xf32>
    %c0_3 = arith.constant 0 : index
    %c0_4 = arith.constant 0 : index
    %3 = vector.load %arg3[%c0_3, %c0_4] : memref<1x4xf32, #tpu.memory_space<vmem>>, vector<1x4xf32>
    %4 = vector.broadcast %3 : vector<1x4xf32> to vector<8x4xf32>
    %5 = arith.addf %2, %4 : vector<8x4xf32>
    %c0_5 = arith.constant 0 : index
    %c0_6 = arith.constant 0 : index
    %6 = vector.load %arg4[%c0_5, %c0_6] : memref<8x4xf32, #tpu.memory_space<vmem>>, vector<8x4xf32>
    tpu.vector_store %arg4[%c0_5, %c0_6], %5 {strides = array<i32>} : memref<8x4xf32, #tpu.memory_space<vmem>>, vector<8x4xf32>,
    return
  }
  func.func @transform_0(%arg0: i32) -> (i32, i32) {
    %c0_i32 = arith.constant 0 : i32
    %c0_i32_0 = arith.constant 0 : i32
    %c0_i32_1 = arith.constant 0 : i32
    return %c0_i32, %c0_i32_0 : i32, i32
  }
  func.func @transform_1(%arg0: i32) -> (i32, i32) {
    %c0_i32 = arith.constant 0 : i32
    %c0_i32_0 = arith.constant 0 : i32
    %c0_i32_1 = arith.constant 0 : i32
    return %c0_i32, %c0_i32_0 : i32, i32
  }
  func.func @transform_2(%arg0: i32) -> (i32, i32) {
    %c0_i32 = arith.constant 0 : i32
    %c0_i32_0 = arith.constant 0 : i32
    %c0_i32_1 = arith.constant 0 : i32
    return %c0_i32, %c0_i32_0 : i32, i32
  }
  func.func @transform_3(%arg0: i32) -> (i32, i32) {
    %c0_i32 = arith.constant 0 : i32
    %c0_i32_0 = arith.constant 0 : i32
    %c0_i32_1 = arith.constant 0 : i32
    return %c0_i32, %c0_i32_0 : i32, i32
  }
}

</mosaic_0001>

<bundles_post_ra>
// kernel: tpu_custom_call.1
= control target key start
LH: loop header
LB: loop body
LE: loop exit
PB: predicated region body
PF: predicated region fallthrough
CT: control target
= control target key end

     0   :  { %v118_v0 = vmov 0.0   ;;  %vm119_vm0 = vmmov 0   ;;  %vm24_vm1 = vcmask 130048   ;;  %vm98_vm2 = vcmask 31744   ;;  %s155_s1 = inlined_call_operand.vmem [shape: f32[16,4], index: 1, kind: input, shape index: {}]   ;;  %s156_s0 = inlined_call_operand.vmem [shape: f32[8,16], index: 0, kind: input, shape index: {}]   ;;  %s157_s2 = inlined_call_operand.vmem [shape: f32[1,4], index: 2, kind: input, shape index: {}]   ;;  %s158_s3 = inlined_call_operand.vmem [shape: f32[8,4], index: 3, kind: output, shape index: {}]  }
   0x1   :  { %109 = vmatprep.subr.mxu0 %v118_v0  ;;  %v16_v1 = vld [vmem:[%s155_s1 + $0x8] sm:$0xff]  ;;  %v15_v2 = vld [vmem:[%s155_s1] sm:$0xff]  ;;  %113 = vmatprep.mubr.msk.f32.mxu0 %vm119_vm0, %v118_v0 }
   0x2   :  { %110 = vmatpush3.msra.mxu0 %v16_v1  ;;  %v14_v3 = vld [vmem:[%s156_s0] sm:$0xff] }
   0x3   :  { %111 = vmatprep.subr.mxu0 %v118_v0  ;;  %v104_v4 = vld [vmem:[%s157_s2] ss:$0 sm:$0xff] }
   0x4   :  { %112 = vmatpush3.msra.mxu0 %v15_v2 }
   0x5   :  { %114 = vmatmul.mubr.msk.f32.vlgmr.msra.gmra.mxu0 %vm24_vm1, %v14_v3 }
  0xc5   :  { %v94_v5 = vpop.f32.mrf.mxu0 }
  0xc6   :  { %v95_v6 = vadd.f32 %v104_v4, %v94_v5 }
  0xc7   :  { %v115_v7 = vpop.f32.mrf.mxu0 }
  0xc8   :  { %99 = vst.msk [vmem:[%s158_s3] sm:$0xff] %vm98_vm2, %v95_v6 }

</bundles_post_ra>
